<compile_context>
chip_gen: v7x
topology: tpu7x:2x2x1
jax: 0.10.0
libtpu: 0.0.40
codegen_flags: <defaults>
</compile_context>

<pallas_src>
import math

import jax
import jax.numpy as jnp
from jax.experimental import pallas as pl
from jax.experimental.pallas import tpu as pltpu


# ---------------------------------------------------------------------------
# Pallas kernels
# ---------------------------------------------------------------------------

def _matmul_kernel(a_ref, b_ref, o_ref, acc_ref):
    """bf16 x bf16 -> f32 tiled matmul; grid = (M_tiles, N_tiles, K_tiles)."""
    k = pl.program_id(2)

    @pl.when(k == 0)
    def _():
        acc_ref[...] = jnp.zeros_like(acc_ref)

    acc_ref[...] += jnp.dot(a_ref[...], b_ref[...],
                            preferred_element_type=jnp.float32)

    @pl.when(k == pl.num_programs(2) - 1)
    def _():
        o_ref[...] = acc_ref[...].astype(o_ref.dtype)


def _matmul_bias_kernel(a_ref, b_ref, bias_ref, o_ref, acc_ref):
    """Same as _matmul_kernel but adds a per-column bias in the epilogue."""
    k = pl.program_id(2)

    @pl.when(k == 0)
    def _():
        acc_ref[...] = jnp.zeros_like(acc_ref)

    acc_ref[...] += jnp.dot(a_ref[...], b_ref[...],
                            preferred_element_type=jnp.float32)

    @pl.when(k == pl.num_programs(2) - 1)
    def _():
        o_ref[...] = (acc_ref[...] + bias_ref[...]).astype(o_ref.dtype)


def _in_act_kernel_factory(act):
    """InstanceNorm over sublane (spatial) axis of a (1, HW, tc) block."""
    def kernel(x_ref, o_ref):
        x = x_ref[...].astype(jnp.float32)
        mean = jnp.mean(x, axis=1, keepdims=True)
        xc = x - mean
        var = jnp.mean(xc * xc, axis=1, keepdims=True)  # biased, like PyTorch
        y = xc * jax.lax.rsqrt(var + 1e-5)
        if act == "relu":
            y = jnp.maximum(y, 0.0)
        elif act == "sigmoid":
            y = jax.nn.sigmoid(y)
        o_ref[...] = y.astype(o_ref.dtype)
    return kernel


def _in_relu_residual_kernel(x_ref, r_ref, o_ref):
    """o = residual + relu(instance_norm(x)) — fuses the RRCNN skip add."""
    x = x_ref[...].astype(jnp.float32)
    mean = jnp.mean(x, axis=1, keepdims=True)
    xc = x - mean
    var = jnp.mean(xc * xc, axis=1, keepdims=True)
    y = jnp.maximum(xc * jax.lax.rsqrt(var + 1e-5), 0.0)
    o_ref[...] = (r_ref[...].astype(jnp.float32) + y).astype(o_ref.dtype)


def _in_pair_add_relu_kernel(g_ref, x_ref, o_ref):
    """o = relu(instance_norm(g) + instance_norm(x)) — attention-gate fusion."""
    def _norm(v):
        v = v.astype(jnp.float32)
        m = jnp.mean(v, axis=1, keepdims=True)
        vc = v - m
        var = jnp.mean(vc * vc, axis=1, keepdims=True)
        return vc * jax.lax.rsqrt(var + 1e-5)
    o_ref[...] = jnp.maximum(_norm(g_ref[...]) + _norm(x_ref[...]),
                             0.0).astype(o_ref.dtype)


# ---------------------------------------------------------------------------
# Pallas wrappers
# ---------------------------------------------------------------------------

def _ceil_to(x, m):
    return ((x + m - 1) // m) * m


def matmul_pallas(a, wp):
    """a: (M, K) f32 activations; wp: prepped weight dict (bf16, pre-padded)."""
    M, K = a.shape
    assert K == wp["k"], (K, wp["k"])
    w, bias, N = wp["w"], wp["b"], wp["n"]
    Kp, Np = w.shape

    # M tiling (second parallel axis; keeps A/acc/out blocks VMEM-bounded).
    if M >= 512:
        tm = 256
    elif M >= 128:
        tm = 128
    else:
        tm = _ceil_to(M, 8)
    Mp = _ceil_to(M, tm)
    # 256-wide K/N tiles feed the v6e/v7x 256-wide MXU; fall back to 128 when
    # the padded dim is not 256-divisible (also the natural v5e choice).
    tk = 256 if Kp % 256 == 0 else 128
    tn = 256 if Np % 256 == 0 else 128

    a_p = jnp.pad(a, ((0, Mp - M), (0, Kp - K))).astype(jnp.bfloat16)

    in_specs = [pl.BlockSpec((tm, tk), lambda i, j, k: (i, k)),
                pl.BlockSpec((tk, tn), lambda i, j, k: (k, j))]
    args = [a_p, w]
    kernel = _matmul_kernel
    if bias is not None:
        in_specs.append(pl.BlockSpec((1, tn), lambda i, j, k: (0, j)))
        args.append(bias)
        kernel = _matmul_bias_kernel

    out = pl.pallas_call(
        kernel,
        out_shape=jax.ShapeDtypeStruct((Mp, Np), jnp.float32),
        grid_spec=pltpu.PrefetchScalarGridSpec(
            num_scalar_prefetch=0,
            grid=(Mp // tm, Np // tn, Kp // tk),
            in_specs=in_specs,
            out_specs=pl.BlockSpec((tm, tn), lambda i, j, k: (i, j)),
            scratch_shapes=[pltpu.VMEM((tm, tn), jnp.float32)],
        ),
        compiler_params=pltpu.CompilerParams(
            dimension_semantics=("parallel", "parallel", "arbitrary")),
    )(*args)

    if Mp == M and Np == N:
        return out
    return out[:M, :N]


def _in_call(kernel, inputs, N, HW, C, out_dtype):
    """Run an instance-norm-family kernel over (N, HW, C) with C on lanes."""
    tc = C if C <= 256 else 256           # all channel counts divide 256
    spec = pl.BlockSpec((1, HW, tc), lambda n, c: (n, 0, c))
    return pl.pallas_call(
        kernel,
        out_shape=jax.ShapeDtypeStruct((N, HW, C), out_dtype),
        grid_spec=pltpu.PrefetchScalarGridSpec(
            num_scalar_prefetch=0,
            grid=(N, C // tc),
            in_specs=[spec] * len(inputs),
            out_specs=spec,
        ),
        compiler_params=pltpu.CompilerParams(
            dimension_semantics=("parallel", "parallel")),
    )(*inputs)


def instance_norm_act(x, act="relu"):
    N, H, W, C = x.shape
    y = _in_call(_in_act_kernel_factory(act), [x.reshape(N, H * W, C)],
                 N, H * W, C, x.dtype)
    return y.reshape(N, H, W, C)


def instance_norm_relu_residual(x, res):
    N, H, W, C = x.shape
    y = _in_call(_in_relu_residual_kernel,
                 [x.reshape(N, H * W, C), res.reshape(N, H * W, C)],
                 N, H * W, C, x.dtype)
    return y.reshape(N, H, W, C)


def instance_norm_pair_add_relu(g, x):
    N, H, W, C = g.shape
    y = _in_call(_in_pair_add_relu_kernel,
                 [g.reshape(N, H * W, C), x.reshape(N, H * W, C)],
                 N, H * W, C, g.dtype)
    return y.reshape(N, H, W, C)


# ---------------------------------------------------------------------------
# Convolution helpers (im2col in JAX, matmul in Pallas) — NHWC layout
# ---------------------------------------------------------------------------

def conv2d_nhwc(x, wp, kh, kw, pad=(0, 0, 0, 0)):
    """Stride-1 conv, NHWC.  wp holds the (kh*kw*Cin, Cout) bf16 matmul weight."""
    N, H, W, C = x.shape
    if kh == 1 and kw == 1:
        patches = x.reshape(N * H * W, C)
        Ho, Wo = H, W
    else:
        xp = jnp.pad(x, ((0, 0), (pad[0], pad[1]), (pad[2], pad[3]), (0, 0)))
        Ho = xp.shape[1] - kh + 1
        Wo = xp.shape[2] - kw + 1
        # TODO(synk): fuse im2col into the matmul via a kh*kw 'arbitrary' grid
        # axis with shifted-slab index_maps (removes the kh*kw x activation
        # HBM inflation) and keep recurrent-block weights VMEM-resident.
        taps = [xp[:, i:i + Ho, j:j + Wo, :]
                for i in range(kh) for j in range(kw)]
        patches = jnp.concatenate(taps, axis=-1).reshape(N * Ho * Wo,
                                                         kh * kw * C)
    out = matmul_pallas(patches, wp)
    return out.reshape(N, Ho, Wo, wp["n"])


def maxpool2x2(x):
    N, H, W, C = x.shape
    return x.reshape(N, H // 2, 2, W // 2, 2, C).max(axis=(2, 4))


# ---------------------------------------------------------------------------
# Model blocks
# ---------------------------------------------------------------------------

def conv3x3_in_relu(x, wp, residual=None):
    y = conv2d_nhwc(x, wp, 3, 3, pad=(1, 1, 1, 1))
    if residual is None:
        return instance_norm_act(y, act="relu")
    return instance_norm_relu_residual(y, residual)


def recurrent_block(x, wp, t=2, final_residual=None):
    x1 = conv3x3_in_relu(x, wp)
    for i in range(t):
        res = final_residual if i == t - 1 else None
        x1 = conv3x3_in_relu(x + x1, wp, residual=res)
    return x1


def rrcnn_block(x, p, t=2):
    x = conv2d_nhwc(x, p["conv1x1"], 1, 1)          # bias kept (no IN follows)
    x1 = recurrent_block(x, p["rec1"], t=t)
    # residual add x + x1 fused into the last IN+ReLU kernel of rec2
    return recurrent_block(x1, p["rec2"], t=t, final_residual=x)


def up_conv_block(x, p):
    """ConvTranspose2d(3,2,1,1) via 4-phase sub-pixel 2x2 conv + IN + ReLU."""
    N, H, W, _ = x.shape
    y = conv2d_nhwc(x, p, 2, 2, pad=(0, 1, 0, 1))   # (N, H, W, 4*Cout)
    cout = p["n"] // 4
    y = y.reshape(N, H, W, 2, 2, cout)
    y = y.transpose(0, 1, 3, 2, 4, 5).reshape(N, 2 * H, 2 * W, cout)
    return instance_norm_act(y, act="relu")


def _psi_head(y_in, w_psi):
    """Cout=1 1x1 conv + InstanceNorm2d(1) + Sigmoid — VPU-sized, plain JAX."""
    y = jnp.einsum("nhwc,c->nhw", y_in, w_psi)
    m = jnp.mean(y, axis=(1, 2), keepdims=True)
    v = jnp.mean(jnp.square(y - m), axis=(1, 2), keepdims=True)
    y = (y - m) * jax.lax.rsqrt(v + 1e-5)
    return jax.nn.sigmoid(y)[..., None]


def attention_block(g, x, p):
    g1 = conv2d_nhwc(g, p["wg"], 1, 1)              # bias dropped (IN follows)
    x1 = conv2d_nhwc(x, p["wx"], 1, 1)
    a = instance_norm_pair_add_relu(g1, x1)         # relu(IN(g1)+IN(x1)) fused
    psi = _psi_head(a, p["psi_w"])
    return x * psi


def r2att_unet_forward(x_nchw, params, t=2):
    x = jnp.transpose(x_nchw, (0, 2, 3, 1)).astype(jnp.float32)   # NHWC

    x1 = rrcnn_block(x, params["RRCNN1"], t)
    x2 = maxpool2x2(x1)
    x2 = rrcnn_block(x2, params["RRCNN2"], t)
    x3 = maxpool2x2(x2)
    x3 = rrcnn_block(x3, params["RRCNN3"], t)
    x4 = maxpool2x2(x3)
    x4 = rrcnn_block(x4, params["RRCNN4"], t)
    x5 = maxpool2x2(x4)
    x5 = rrcnn_block(x5, params["RRCNN5"], t)

    d5 = up_conv_block(x5, params["up5"])
    x4a = attention_block(d5, x4, params["att5"])
    d5 = jnp.concatenate([x4a, d5], axis=-1)
    d5 = rrcnn_block(d5, params["up_RRCNN5"], t)

    d4 = up_conv_block(d5, params["up4"])
    x3a = attention_block(d4, x3, params["att4"])
    d4 = jnp.concatenate([x3a, d4], axis=-1)
    d4 = rrcnn_block(d4, params["up_RRCNN4"], t)

    d3 = up_conv_block(d4, params["up3"])
    x2a = attention_block(d3, x2, params["att3"])
    d3 = jnp.concatenate([x2a, d3], axis=-1)
    d3 = rrcnn_block(d3, params["up_RRCNN3"], t)

    d2 = up_conv_block(d3, params["up2"])
    x1a = attention_block(d2, x1, params["att2"])
    d2 = jnp.concatenate([x1a, d2], axis=-1)
    d2 = rrcnn_block(d2, params["up_RRCNN2"], t)

    # Final Cout=1 1x1 conv: lane reduction on the VPU (plain JAX), keeps bias.
    d1 = jnp.einsum("nhwc,co->nhwo", d2, params["conv_1x1_w"]) \
        + params["conv_1x1_b"]
    out = x + d1
    return jnp.transpose(out, (0, 3, 1, 2))          # back to NCHW


# ---------------------------------------------------------------------------
# Parameter init: weights pre-reshaped / pre-padded / pre-cast to bf16 once.
# ---------------------------------------------------------------------------

def _prep_matmul_weight(wmat, bias):
    K, N = wmat.shape
    Kp, Np = _ceil_to(K, 128), _ceil_to(N, 128)
    entry = {
        "w": jnp.pad(wmat, ((0, Kp - K), (0, Np - N))).astype(jnp.bfloat16),
        "k": K,
        "n": N,
        "b": None,
    }
    if bias is not None:
        entry["b"] = jnp.pad(bias, (0, Np - N)).reshape(1, Np).astype(jnp.float32)
    return entry


def _init_conv_w(key, cout, cin, k):
    wkey, bkey = jax.random.split(key)
    bound = 1.0 / math.sqrt(cin * k * k)
    w = jax.random.uniform(wkey, (cout, cin, k, k), jnp.float32, -bound, bound)
    b = jax.random.uniform(bkey, (cout,), jnp.float32, -bound, bound)
    return w, b


def _conv_to_matmul(w):
    # (Cout, Cin, kh, kw) -> (kh*kw*Cin, Cout); K ordered (kh, kw, cin) to
    # match NHWC im2col tap ordering.
    cout, cin, kh, kw = w.shape
    return jnp.transpose(w, (2, 3, 1, 0)).reshape(kh * kw * cin, cout)


def _deconv_to_matmul(wt):
    """ConvTranspose2d(k=3,s=2,p=1,op=1) -> equivalent 2x2 conv producing the
    4 sub-pixel output phases.  Returns (2*2*Cin, 2*2*Cout) with K ordered
    (di, dj, cin) and N ordered (phase_h, phase_w, cout)."""
    cin, cout = wt.shape[0], wt.shape[1]
    w_eq = jnp.zeros((2, 2, cin, 2, 2, cout), jnp.float32)
    taps = [
        ((0, 0), (0, 0), (1, 1)),
        ((0, 1), (0, 0), (1, 2)), ((0, 1), (0, 1), (1, 0)),
        ((1, 0), (0, 0), (2, 1)), ((1, 0), (1, 0), (0, 1)),
        ((1, 1), (0, 0), (2, 2)), ((1, 1), (0, 1), (2, 0)),
        ((1, 1), (1, 0), (0, 2)), ((1, 1), (1, 1), (0, 0)),
    ]
    for (ph, pw), (di, dj), (kh, kw) in taps:
        w_eq = w_eq.at[di, dj, :, ph, pw, :].set(wt[:, :, kh, kw])
    return w_eq.reshape(4 * cin, 4 * cout)


def _init_rrcnn(key, cin, cout):
    ks = jax.random.split(key, 3)
    w1, b1 = _init_conv_w(ks[0], cout, cin, 1)
    wr1, _ = _init_conv_w(ks[1], cout, cout, 3)   # bias cancelled by IN
    wr2, _ = _init_conv_w(ks[2], cout, cout, 3)   # bias cancelled by IN
    return {
        "conv1x1": _prep_matmul_weight(_conv_to_matmul(w1), b1),
        "rec1": _prep_matmul_weight(_conv_to_matmul(wr1), None),
        "rec2": _prep_matmul_weight(_conv_to_matmul(wr2), None),
    }


def _init_att(key, fg, fl, fint):
    ks = jax.random.split(key, 3)
    wg, _ = _init_conv_w(ks[0], fint, fg, 1)      # bias cancelled by IN
    wx, _ = _init_conv_w(ks[1], fint, fl, 1)      # bias cancelled by IN
    wpsi, _ = _init_conv_w(ks[2], 1, fint, 1)     # bias cancelled by IN
    return {
        "wg": _prep_matmul_weight(_conv_to_matmul(wg), None),
        "wx": _prep_matmul_weight(_conv_to_matmul(wx), None),
        "psi_w": wpsi[0, :, 0, 0],                # (fint,)
    }


def _init_upconv(key, cin, cout, k=3):
    wkey, _ = jax.random.split(key)
    bound = 1.0 / math.sqrt(cin * k * k)
    wt = jax.random.uniform(wkey, (cin, cout, k, k), jnp.float32, -bound, bound)
    return _prep_matmul_weight(_deconv_to_matmul(wt), None)  # bias cancelled


def init_params(key, img_ch=1, output_ch=1):
    keys = jax.random.split(key, 18)
    p = {}
    p["RRCNN1"] = _init_rrcnn(keys[0], img_ch, 64)
    p["RRCNN2"] = _init_rrcnn(keys[1], 64, 128)
    p["RRCNN3"] = _init_rrcnn(keys[2], 128, 256)
    p["RRCNN4"] = _init_rrcnn(keys[3], 256, 512)
    p["RRCNN5"] = _init_rrcnn(keys[4], 512, 1024)
    p["up5"] = _init_upconv(keys[5], 1024, 512)
    p["att5"] = _init_att(keys[6], 512, 512, 256)
    p["up_RRCNN5"] = _init_rrcnn(keys[7], 1024, 512)
    p["up4"] = _init_upconv(keys[8], 512, 256)
    p["att4"] = _init_att(keys[9], 256, 256, 128)
    p["up_RRCNN4"] = _init_rrcnn(keys[10], 512, 256)
    p["up3"] = _init_upconv(keys[11], 256, 128)
    p["att3"] = _init_att(keys[12], 128, 128, 64)
    p["up_RRCNN3"] = _init_rrcnn(keys[13], 256, 128)
    p["up2"] = _init_upconv(keys[14], 128, 64)
    p["att2"] = _init_att(keys[15], 64, 64, 32)
    p["up_RRCNN2"] = _init_rrcnn(keys[16], 128, 64)
    w1x1, b1x1 = _init_conv_w(keys[17], output_ch, 64, 1)
    p["conv_1x1_w"] = jnp.transpose(w1x1[:, :, 0, 0], (1, 0))   # (64, output_ch)
    p["conv_1x1_b"] = b1x1
    return p


# ---------------------------------------------------------------------------
# Main
# ---------------------------------------------------------------------------

if __name__ == "__main__":
    key = jax.random.PRNGKey(0)
    pkey, xkey = jax.random.split(key)

    params = init_params(pkey, img_ch=1, output_ch=1)

    # NCHW input, batch=2, img_ch=1, 16x16 spatial (4 maxpools -> 1x1 bottleneck)
    x = jax.random.normal(xkey, (2, 1, 16, 16), dtype=jnp.float32)

    out = r2att_unet_forward(x, params, t=2)
    out = jax.block_until_ready(out)

    assert out.shape == (2, 1, 16, 16), out.shape
    assert out.dtype == jnp.float32
    assert bool(jnp.all(jnp.isfinite(out)))
    print("KERNEL_OK")
</pallas_src>

<mosaic_0001>
module attributes {stable_mosaic.version = 11 : i64} {
  func.func @_matmul_bias_kernel(%arg0: i32, %arg1: i32, %arg2: i32, %arg3: memref<256x128xbf16, #tpu.memory_space<vmem>>, %arg4: memref<128x128xbf16, #tpu.memory_space<vmem>>, %arg5: memref<1x128xf32, #tpu.memory_space<vmem>>, %arg6: memref<256x128xf32, #tpu.memory_space<vmem>>, %arg7: memref<256x128xf32, #tpu.memory_space<vmem>>) attributes {dimension_semantics = [#tpu.dimension_semantics<parallel>, #tpu.dimension_semantics<parallel>, #tpu.dimension_semantics<arbitrary>], iteration_bounds = array<i64: 2, 1, 1>, scalar_prefetch = 0 : i64, scratch_operands = 1 : i64, tpu.core_type = #tpu.core_type<tc>, window_params = [{transform_indices = @transform_0, window_bounds = array<i64: 256, 128>}, {transform_indices = @transform_1, window_bounds = array<i64: 128, 128>}, {transform_indices = @transform_2, window_bounds = array<i64: 1, 128>}, {transform_indices = @transform_3, window_bounds = array<i64: 256, 128>}]} {
    %c0_i32 = arith.constant 0 : i32
    %0 = arith.cmpi eq, %arg2, %c0_i32 : i32
    %1 = arith.extui %0 : i1 to i32
    %c0_i32_0 = arith.constant 0 : i32
    %2 = arith.cmpi ne, %1, %c0_i32_0 : i32
    scf.if %2 {
      %cst_10 = arith.constant 0.000000e+00 : f32
      %12 = vector.broadcast %cst_10 : f32 to vector<256x128xf32>
      %c0_11 = arith.constant 0 : index
      %c0_12 = arith.constant 0 : index
      %13 = vector.load %arg7[%c0_11, %c0_12] : memref<256x128xf32, #tpu.memory_space<vmem>>, vector<256x128xf32>
      tpu.vector_store %arg7[%c0_11, %c0_12], %12 {strides = array<i32>} : memref<256x128xf32, #tpu.memory_space<vmem>>, vector<256x128xf32>,
    } else {
    }
    %c0 = arith.constant 0 : index
    %c0_1 = arith.constant 0 : index
    %3 = vector.load %arg7[%c0, %c0_1] : memref<256x128xf32, #tpu.memory_space<vmem>>, vector<256x128xf32>
    %c0_2 = arith.constant 0 : index
    %c0_3 = arith.constant 0 : index
    %4 = vector.load %arg3[%c0_2, %c0_3] : memref<256x128xbf16, #tpu.memory_space<vmem>>, vector<256x128xbf16>
    %c0_4 = arith.constant 0 : index
    %c0_5 = arith.constant 0 : index
    %5 = vector.load %arg4[%c0_4, %c0_5] : memref<128x128xbf16, #tpu.memory_space<vmem>>, vector<128x128xbf16>
    %cst = arith.constant dense<0.000000e+00> : vector<256x128xf32>
    %6 = tpu.matmul %4, %5, %cst {dimension_numbers = #tpu.dot_dimension_numbers<[1], [0], [0], [1], [0, 0, 1, 1], [], []>} : vector<256x128xbf16>, vector<128x128xbf16>, vector<256x128xf32> -> vector<256x128xf32>
    %7 = arith.addf %3, %6 : vector<256x128xf32>
    %c0_6 = arith.constant 0 : index
    %c0_7 = arith.constant 0 : index
    %8 = vector.load %arg7[%c0_6, %c0_7] : memref<256x128xf32, #tpu.memory_space<vmem>>, vector<256x128xf32>
    tpu.vector_store %arg7[%c0_6, %c0_7], %7 {strides = array<i32>} : memref<256x128xf32, #tpu.memory_space<vmem>>, vector<256x128xf32>,
    %c0_i32_8 = arith.constant 0 : i32
    %9 = arith.cmpi eq, %arg2, %c0_i32_8 : i32
    %10 = arith.extui %9 : i1 to i32
    %c0_i32_9 = arith.constant 0 : i32
    %11 = arith.cmpi ne, %10, %c0_i32_9 : i32
    scf.if %11 {
      %c0_10 = arith.constant 0 : index
      %c0_11 = arith.constant 0 : index
      %12 = vector.load %arg7[%c0_10, %c0_11] : memref<256x128xf32, #tpu.memory_space<vmem>>, vector<256x128xf32>
      %c0_12 = arith.constant 0 : index
      %c0_13 = arith.constant 0 : index
      %13 = vector.load %arg5[%c0_12, %c0_13] : memref<1x128xf32, #tpu.memory_space<vmem>>, vector<1x128xf32>
      %14 = vector.broadcast %13 : vector<1x128xf32> to vector<256x128xf32>
      %15 = arith.addf %12, %14 : vector<256x128xf32>
      %c0_14 = arith.constant 0 : index
      %c0_15 = arith.constant 0 : index
      %16 = vector.load %arg6[%c0_14, %c0_15] : memref<256x128xf32, #tpu.memory_space<vmem>>, vector<256x128xf32>
      tpu.vector_store %arg6[%c0_14, %c0_15], %15 {strides = array<i32>} : memref<256x128xf32, #tpu.memory_space<vmem>>, vector<256x128xf32>,
    } else {
    }
    return
  }
  func.func @transform_0(%arg0: i32, %arg1: i32, %arg2: i32) -> (i32, i32) {
    %c0_i32 = arith.constant 0 : i32
    return %arg0, %arg2 : i32, i32
  }
  func.func @transform_1(%arg0: i32, %arg1: i32, %arg2: i32) -> (i32, i32) {
    %c0_i32 = arith.constant 0 : i32
    return %arg2, %arg1 : i32, i32
  }
  func.func @transform_2(%arg0: i32, %arg1: i32, %arg2: i32) -> (i32, i32) {
    %c0_i32 = arith.constant 0 : i32
    %c0_i32_0 = arith.constant 0 : i32
    return %c0_i32, %arg1 : i32, i32
  }
  func.func @transform_3(%arg0: i32, %arg1: i32, %arg2: i32) -> (i32, i32) {
    %c0_i32 = arith.constant 0 : i32
    return %arg0, %arg1 : i32, i32
  }
}

</mosaic_0001>

<bundles_post_ra>
// kernel: tpu_custom_call.1
= control target key start
LH: loop header
LB: loop body
LE: loop exit
PB: predicated region body
PF: predicated region fallthrough
CT: control target
= control target key end

     0   :  { %8 = vsyncpa [#allocation4], 0  ;;  %s1700_s0 = inlined_call_operand.hbm [shape: bf16[512,128], index: 0, kind: input, shape index: {}]   ;;  %s1701_s1 = inlined_call_operand.hbm [shape: bf16[128,128], index: 1, kind: input, shape index: {}]   ;;  %s1702_s2 = inlined_call_operand.vmem [shape: f32[1,128], index: 2, kind: input, shape index: {}]   ;;  %s1703_s3 = inlined_call_operand.hbm [shape: f32[512,128], index: 3, kind: output, shape index: {}]  }
   0x1   :  { %10 = vsyncpa [#allocation4 + $0x1], 0 }
   0x2   :  { %11 = vsyncpa [#allocation7], 0 }
   0x3   :  { %12 = vsyncpa [#allocation5], 0 }
   0x4   :  { %14 = vsyncpa [#allocation5 + $0x1], 0  ;;  %s1384_s12 = smov 0   ;;  %s1386_s13 = smov 0  }
   0x5   :  { %s1388_s14 = smov 0   ;;  %s1390_s15 = smov 0  }
   0x6   :  { %s1392_s16 = smov 0   ;;  %s1394_s17 = smov 0  }
   0x7 LB: > { %s977_s18 = sadd.s32 4294967295, %s1355_s17   ;;  %s978_s19 = sadd.s32 4294967294, %s1355_s17   ;;  %s1355_s17 = sphi %s1394_s17, %s20_s17   ;;  %s1351_s16 = sphi %s1392_s16, %s1727_s16   ;;  %s1347_s15 = sphi %s1390_s15, %s1726_s15   ;;  %s1343_s14 = sphi %s1388_s14, %s1725_s14   ;;  %s1339_s13 = sphi %s1386_s13, %s1724_s13   ;;  %s1335_s12 = sphi %s1384_s12, %s1723_s12  }
   0x8   : > { %p61_p0 = scmp.ne.s32.totalorder %s1339_s13, %s1335_s12  ;;  %p1418_p1 = scmp.eq.s32.totalorder %s977_s18, 0 }
   0x9   : > { %p1422_p2 = scmp.eq.s32.totalorder %s977_s18, 1  ;;  %p147_p3 = scmp.eq.s32.totalorder %s978_s19, 1 }
   0xa   : > { %s1708_s20 = scalar_select %p1418_p1, 1, 0 }
   0xb   : > { %s1709_s21 = scalar_select %p1422_p2, 1, 0 }
   0xc   : > { %p1428_p4 = por %p1418_p1, %p61_p0  ;;  %p979_p5 = scmp.ge.s32.totalorder %s1355_s17, 1 }
   0xd   : > { %p1433_p6 = por %p147_p3, %p61_p0  ;;  %p154_p7 = scmp.lt.s32.totalorder %s1355_s17, 3 }
   0xe   : > { %s1710_s22 = scalar_select %p1428_p4, 1, 0 }
   0xf   : > { %s1711_s23 = scalar_select %p1433_p6, 1, 0 }
  0x10   : > { %p1438_p8 = pnand %p979_p5, %p154_p7  ;;  %s1357_s25 = smov [#allocation6]  }
  0x11   : > { %s170_s26 = sshll.u32 %s1357_s25, 4  ;;  %s39_s28 = sadd.s32 1, %s1351_s16  ;;  %s171_s26 = int_to_ptr.vmem [resolvable:$true] %s170_s26 }
  0x12   : > { %s1712_s24 = scalar_select %p1438_p8, 1, 0 }
  0x13   : > { %p1118_p9 = pneg %p1438_p8  ;;  %s1211_s4 = scalar_lea.hbm %s1701_s1, 1024 }
  0x14   : > { %p1212_p12 = scmp.ne.s32.totalorder %s1701_s1, %s1211_s4  ;;  %p1218_p5 = scmp.lt.u32.totalorder %s1211_s4, %s1701_s1 }
  0x15   : > { %p1447_p11 = pnand %p1118_p9, %p1418_p1 }
  0x17   : > { %p1213_p13 = pneg %p1447_p11 }
  0x19   : > { %p1214_p0 = pnand %p1213_p13, %p1212_p12 }
  0x1b   : > { %p1215_p3 = pneg %p1214_p0 }
  0x1d   : > { %p1220_p7 = pnand %p1218_p5, %p1215_p3 }
  0x1f   : > { %1223 = shalt.err (!%p1220_p7)
}
  0x20   : > { %s1224_s9 = scalar_lea.vmem %s171_s26, 1024  ;;  %p1232_p1 = scmp.lt.s32.totalorder %s171_s26, %s171_s26 }
  0x21   : > { %p1225_p9 = scmp.ne.s32.totalorder %s171_s26, %s1224_s9  ;;  %p1233_p4 = scmp.lt.s32.totalorder %s1224_s9, %s1224_s9 }
  0x23   : > { %p1227_p10 = pnand %p1225_p9, %p1213_p13  ;;  %p1234_p8 = por %p1233_p4, %p1232_p1 }
  0x25   : > { %p1228_p6 = pneg %p1227_p10 }
  0x27   : > { %p1235_p2 = pnand %p1234_p8, %p1228_p6 }
  0x29   : > { %1238 = shalt.err (!%p1235_p2)
}
  0x2a   : > { %s1358_s10 = smov 64   ;;  %s1359_s11 = smov 4  }
  0x2b   : > { %1121 = dma.hbm_to_vmem [thread:$0]  (!%p1447_p11), %s1701_s1, 1024, %s171_s26, [#allocation7], %s1358_s10, %s1358_s10, %s1359_s11  }
  0x2c   : > { %p41_p1 = scmp.ge.s32.totalorder %s39_s28, 2  ;;  %s48_s25 = sadd.s32 1, %s1343_s14 }
  0x2d   : > { %p55_p2 = scmp.ne.s32.totalorder %s1343_s14, %s1339_s13  ;;  %p56_p4 = scmp.eq.s32.totalorder %s1355_s17, 0 }
  0x2e   : > { %s1729_s28 = smov (%p41_p1, %s39_s28), 0  ;;  %p1715_p8 = scmp.ne.s32.totalorder %s1709_s21, 0 }
  0x2f   : > { %p1477_p6 = por %p56_p4, %p55_p2  ;;  %s43_s30 = ssub.s32 %s1351_s16, %s1729_s28 }
  0x30   : > { %p1483_p10 = por %p1715_p8, %p55_p2  ;;  %p1131_p12 = scmp.lt.s32.totalorder %s1355_s17, 2 }
  0x31   : > { %p46_p11 = scmp.eq.s32.totalorder %s43_s30, 0  ;;  %s190_s26 = sand.u32 1, %s1343_s14  }
  0x32   : > { %s983_s4 = sshll.u32 %s190_s26, 7  ;;  %s1020_s6 = sshll.u32 %s1351_s16, 11 }
  0x33   : > { %s1492_s5 = scalar_select %p46_p11, %s1343_s14, %s48_s25  }
  0x34   : > { %s1498_s9 = scalar_lea.hbm %s1700_s0, %s1020_s6  ;;  %s194_s21 = scalar_lea.vmem [#allocation3], %s983_s4 }
  0x35   : > { %s202_s18 = sshll.u32 %s194_s21, 4  ;;  %p1504_p13 = pnand %p1131_p12, %p1477_p6  ;;  %s1500_s18 = int_to_ptr.vmem [resolvable:$true] %s202_s18 }
  0x36   : > { %s1508_s25 = scalar_lea.sflag [#allocation4], %s190_s26  ;;  %s1239_s30 = scalar_lea.hbm %s1498_s9, 2048 }
  0x37   : > { %p1240_p0 = scmp.ne.s32.totalorder %s1498_s9, %s1239_s30  ;;  %p1241_p3 = pneg %p1504_p13 }
  0x38   : > { %s1244_s29 = scalar_lea.hbm %s1700_s0, 4096  ;;  %p1245_p9 = scmp.lt.u32.totalorder %s1498_s9, %s1700_s0 }
  0x39   : > { %p1242_p5 = pnand %p1241_p3, %p1240_p0  ;;  %p1246_p1 = scmp.lt.u32.totalorder %s1244_s29, %s1239_s30 }
  0x3a   : > { %p1248_p4 = scmp.lt.u32.totalorder %s1239_s30, %s1498_s9 }
  0x3b   : > { %p1243_p7 = pneg %p1242_p5  ;;  %p1247_p2 = por %p1246_p1, %p1245_p9 }
  0x3d   : > { %p1249_p6 = por %p1248_p4, %p1247_p2 }
  0x3f   : > { %p1250_p8 = pnand %p1249_p6, %p1243_p7 }
  0x41   : > { %1253 = shalt.err (!%p1250_p8)
}
  0x42   : > { %s1254_s26 = scalar_lea.vmem %s1500_s18, 2048  ;;  %s1360_s21 = smov [#allocation3]  }
  0x43   : > { %p1255_p12 = scmp.ne.s32.totalorder %s1500_s18, %s1254_s26  ;;  %s1259_s4 = sshll.u32 %s1360_s21, 4  ;;  %s1260_s4 = int_to_ptr.vmem [resolvable:$false] %s1259_s4 }
  0x44   : > { %s1261_s6 = scalar_lea.vmem %s1260_s4, 4096  ;;  %p1262_p5 = scmp.lt.s32.totalorder %s1500_s18, %s1260_s4 }
  0x45   : > { %p1257_p11 = pnand %p1255_p12, %p1241_p3  ;;  %p1263_p9 = scmp.lt.s32.totalorder %s1261_s6, %s1254_s26 }
  0x47   : > { %p1258_p0 = pneg %p1257_p11  ;;  %p1264_p1 = por %p1263_p9, %p1262_p5 }
  0x49   : > { %p1265_p2 = pnand %p1264_p1, %p1258_p0 }
  0x4b   : > { %1268 = shalt.err (!%p1265_p2)
}
  0x4c   : > { %1125 = dma.hbm_to_vmem [thread:$0]  (!%p1504_p13), %s1498_s9, 2048, %s1500_s18, %s1508_s25, %s1358_s10, %s1358_s10, %s1359_s11  }
  0x4d   : > { %p1718_p3 = scmp.ne.s32.totalorder %s1712_s24, 0 }
  0x4e   : > { %s1542_s30 = sand.u32 (!%p1718_p3), 1, %s1339_s13   ;;  %p1719_p7 = scmp.ne.s32.totalorder (!%p1718_p3), %s1710_s22, 0 }
  0x4f   : > { %214 = sbr.rel (%p1718_p3) target bundleno = 379 (0x17b), region = 32  ;;  %s987_s29 = sshll.u32 (!%p1718_p3), %s1542_s30, 7 }
  0x50   : > { %s217_s7 = scalar_lea.sflag (!%p1718_p3), [#allocation4], %s1542_s30  ;;  %s1546_s8 = scalar_lea.vmem (!%p1718_p3), [#allocation3], %s987_s29 }
  0x56   : > { %1322 = dma.done.wait (%p1719_p7), %s217_s7, 2048  }
  0x57   : > { %1324 = vsyncadd (%p1719_p7), %s217_s7, 4294965248  ;;  %p1720_p13 = scmp.ne.s32.totalorder %s1708_s20, 0 }
  0x59   : > { %1326 = dma.done.wait (%p1720_p13), [#allocation7], 1024  }
  0x5a   : > { %1328 = vsyncadd (%p1720_p13), [#allocation7], 4294966272  ;;  %v1187_v0 = vld [vmem:[#allocation6] sm:$0xff]   ;;  %v1188_v1 = vld [vmem:[#allocation6 + $0x8] sm:$0xff]   ;;  %s989_s20 = sshll.u32 %s1542_s30, 8  ;;  %s1021_s11 = sshll.u32 %s1347_s15, 12 }
  0x5b   : > { %1046 = vmatprep.subr.bf16.mxu0 %v1187_v0  ;;  %1094 = vmatprep.subr.bf16.mxu1 %v1187_v0  ;;  %v1189_v2 = vld [vmem:[#allocation6 + $0x10] sm:$0xff]   ;;  %v1190_v3 = vld [vmem:[#allocation6 + $0x18] sm:$0xff]   ;;  %v1195_v4 = vld [vmem:[%s1546_s8] sm:$0xff]   ;;  %s1582_s10 = scalar_lea.vmem [#allocation8], %s989_s20  ;;  %s1641_s19 = scalar_lea.hbm %s1703_s3, %s1021_s11 }
  0x5c   : > { %1047 = vmatpush3.bf16.msra.mxu0 %v1187_v0  ;;  %1102 = vmatpush3.bf16.msra.mxu1 %v1187_v0  ;;  %v1196_v5 = vld [vmem:[%s1546_s8 + $0x40] sm:$0xff]   ;;  %v1192_v7 = vld [vmem:[#allocation6 + $0x28] sm:$0xff]   ;;  %v1193_v8 = vld [vmem:[#allocation6 + $0x30] sm:$0xff]   ;;  %s863_s9 = sshll.u32 %s1582_s10, 4  ;;  %s849_s25 = scalar_lea.sflag [#allocation5], %s1542_s30  ;;  %s1643_s9 = int_to_ptr.vmem [resolvable:$true] %s863_s9 }
  0x5d   : > { %1048 = vmatprep.subr.bf16.mxu0 %v1188_v1  ;;  %1095 = vmatprep.subr.bf16.mxu1 %v1188_v1  ;;  %v1191_v6 = vld [vmem:[#allocation6 + $0x20] sm:$0xff]   ;;  %v1194_v9 = vld [vmem:[#allocation6 + $0x38] sm:$0xff]   ;;  %v1197_v10 = vld [vmem:[%s1546_s8 + $0x8] sm:$0xff]   ;;  %s1269_s26 = scalar_lea.vmem %s1643_s9, 4096  ;;  %s1361_s21 = smov [#allocation8]  }
  0x5e   : > { %1062 = vmatprep.mubr.bf16.mxu0 %v1195_v4  ;;  %1078 = vmatprep.mubr.bf16.mxu1 %v1196_v5  ;;  %v1198_v11 = vld [vmem:[%s1546_s8 + $0x48] sm:$0xff]   ;;  %v1199_v12 = vld [vmem:[%s1546_s8 + $0x10] sm:$0xff]   ;;  %v1201_v14 = vld [vmem:[%s1546_s8 + $0x18] sm:$0xff]   ;;  %p1270_p4 = scmp.ne.s32.totalorder %s1643_s9, %s1269_s26  ;;  %s1273_s4 = sshll.u32 %s1361_s21, 4  ;;  %s1274_s4 = int_to_ptr.vmem [resolvable:$false] %s1273_s4 }
  0x5f   : > { %v1200_v13 = vld [vmem:[%s1546_s8 + $0x50] sm:$0xff]   ;;  %v1202_v15 = vld [vmem:[%s1546_s8 + $0x58] sm:$0xff]   ;;  %v1203_v16 = vld [vmem:[%s1546_s8 + $0x20] sm:$0xff]   ;;  %s1275_s6 = scalar_lea.vmem %s1274_s4, 8192  ;;  %p1276_p12 = scmp.lt.s32.totalorder %s1643_s9, %s1274_s4 }
  0x60   : > { %1049 = vmatpush3.bf16.msra.mxu0 %v1188_v1  ;;  %1103 = vmatpush3.bf16.msra.mxu1 %v1188_v1  ;;  %v1204_v17 = vld [vmem:[%s1546_s8 + $0x60] sm:$0xff]   ;;  %v1205_v18 = vld [vmem:[%s1546_s8 + $0x28] sm:$0xff]   ;;  %v1207_v20 = vld [vmem:[%s1546_s8 + $0x30] sm:$0xff]   ;;  %p1271_p6 = pnand %p1270_p4, %p1483_p10  ;;  %p1277_p11 = scmp.lt.s32.totalorder %s1275_s6, %s1269_s26 }
  0x61   : > { %1050 = vmatprep.subr.bf16.mxu0 %v1189_v2  ;;  %1096 = vmatprep.subr.bf16.mxu1 %v1189_v2  ;;  %v1206_v19 = vld [vmem:[%s1546_s8 + $0x68] sm:$0xff]   ;;  %v1208_v21 = vld [vmem:[%s1546_s8 + $0x70] sm:$0xff]   ;;  %v1209_v22 = vld [vmem:[%s1546_s8 + $0x38] sm:$0xff]  }
  0x62   : > { %v1210_v23 = vld [vmem:[%s1546_s8 + $0x78] sm:$0xff]   ;;  %v1576_v24 = vld [vmem:[%s1702_s2] ss:$0 sm:$0xff]  ;;  %p1272_p8 = pneg %p1271_p6  ;;  %p1278_p0 = por %p1277_p11, %p1276_p12 }
  0x64   : > { %1051 = vmatpush3.bf16.msra.mxu0 %v1189_v2  ;;  %1104 = vmatpush3.bf16.msra.mxu1 %v1189_v2  ;;  %p1279_p5 = pnand %p1278_p0, %p1272_p8 }
  0x65   : > { %1052 = vmatprep.subr.bf16.mxu0 %v1190_v3  ;;  %1097 = vmatprep.subr.bf16.mxu1 %v1190_v3 }
  0x68   : > { %1053 = vmatpush3.bf16.msra.mxu0 %v1190_v3  ;;  %1105 = vmatpush3.bf16.msra.mxu1 %v1190_v3 }
  0x69   : > { %1054 = vmatprep.subr.bf16.mxu0 %v1191_v6  ;;  %1098 = vmatprep.subr.bf16.mxu1 %v1191_v6 }
  0x6c   : > { %1055 = vmatpush3.bf16.msra.mxu0 %v1191_v6  ;;  %1106 = vmatpush3.bf16.msra.mxu1 %v1191_v6 }
  0x6d   : > { %1056 = vmatprep.subr.bf16.mxu0 %v1192_v7  ;;  %1099 = vmatprep.subr.bf16.mxu1 %v1192_v7 }
  0x70   : > { %1057 = vmatpush3.bf16.msra.mxu0 %v1192_v7  ;;  %1107 = vmatpush3.bf16.msra.mxu1 %v1192_v7 }
  0x71   : > { %1058 = vmatprep.subr.bf16.mxu0 %v1193_v8  ;;  %1100 = vmatprep.subr.bf16.mxu1 %v1193_v8 }
  0x74   : > { %1059 = vmatpush3.bf16.msra.mxu0 %v1193_v8  ;;  %1108 = vmatpush3.bf16.msra.mxu1 %v1193_v8 }
  0x75   : > { %1060 = vmatprep.subr.bf16.mxu0 %v1194_v9  ;;  %1101 = vmatprep.subr.bf16.mxu1 %v1194_v9 }
  0x78   : > { %1061 = vmatpush3.bf16.msra.mxu0 %v1194_v9  ;;  %1109 = vmatpush3.bf16.msra.mxu1 %v1194_v9 }
  0x7b   : > { %1063 = vmatmul.mubr.bf16.vlgmr.msra.gmra.mrb[0].mxu0 %v1197_v10  ;;  %1079 = vmatmul.mubr.bf16.vlgmr.msra.gmra.mrb[0].mxu1 %v1198_v11 }
  0x7c   : > { %1066 = vmatprep.mubr.bf16.mxu0 %v1199_v12  ;;  %1082 = vmatprep.mubr.bf16.mxu1 %v1200_v13 }
  0x83   : > { %1067 = vmatmul.mubr.bf16.gmra.mrb[4].mxu0 %v1201_v14  ;;  %1083 = vmatmul.mubr.bf16.gmra.mrb[4].mxu1 %v1202_v15 }
  0x84   : > { %1070 = vmatprep.mubr.bf16.mxu0 %v1203_v16  ;;  %1086 = vmatprep.mubr.bf16.mxu1 %v1204_v17 }
  0x8b   : > { %1071 = vmatmul.mubr.bf16.gmra.mrb[8].mxu0 %v1205_v18  ;;  %1087 = vmatmul.mubr.bf16.gmra.mrb[8].mxu1 %v1206_v19 }
  0x8c   : > { %1074 = vmatprep.mubr.bf16.mxu0 %v1207_v20  ;;  %1090 = vmatprep.mubr.bf16.mxu1 %v1208_v21 }
  0x93   : > { %1075 = vmatmul.mubr.bf16.gmra.mrb[12].mxu0 %v1209_v22  ;;  %1091 = vmatmul.mubr.bf16.gmra.mrb[12].mxu1 %v1210_v23 }
 0x14e   : > { %v1064_v25 = vpop.f32.mrb[0].mxu0  ;;  %v1080_v26 = vpop.f32.mrb[0].mxu1 }
 0x14f   : > { %v786_v27 = vadd.f32 %v1064_v25, %v1576_v24  ;;  %v802_v28 = vadd.f32 %v1080_v26, %v1576_v24  ;;  %v551_v29 = vpop.f32.mrb[1].mxu0  ;;  %v615_v30 = vpop.f32.mrb[1].mxu1 }
 0x150   : > { %v784_v31 = vadd.f32 %v1576_v24, %v551_v29  ;;  %v800_v32 = vadd.f32 %v1576_v24, %v615_v30  ;;  %v1065_v33 = vpop.f32.mrb[2].mxu0  ;;  %v1081_v34 = vpop.f32.mrb[2].mxu1 }
 0x151   : > { %818 = vst [vmem:[%s1582_s10 + $0x10] sm:$0xff] %v786_v27  ;;  %834 = vst [vmem:[%s1582_s10 + $0x90] sm:$0xff] %v802_v28  ;;  %v787_v35 = vadd.f32 %v1065_v33, %v1576_v24  ;;  %v803_v36 = vadd.f32 %v1081_v34, %v1576_v24  ;;  %v554_v37 = vpop.f32.mrb[3].mxu0  ;;  %v618_v38 = vpop.f32.mrb[3].mxu1 }
 0x152   : > { %816 = vst [vmem:[%s1582_s10] sm:$0xff] %v784_v31  ;;  %832 = vst [vmem:[%s1582_s10 + $0x80] sm:$0xff] %v800_v32  ;;  %v785_v39 = vadd.f32 %v1576_v24, %v554_v37  ;;  %v801_v40 = vadd.f32 %v1576_v24, %v618_v38 }
 0x153   : > { %819 = vst [vmem:[%s1582_s10 + $0x18] sm:$0xff] %v787_v35  ;;  %835 = vst [vmem:[%s1582_s10 + $0x98] sm:$0xff] %v803_v36 }
 0x154   : > { %817 = vst [vmem:[%s1582_s10 + $0x8] sm:$0xff] %v785_v39  ;;  %833 = vst [vmem:[%s1582_s10 + $0x88] sm:$0xff] %v801_v40 }
 0x156   : > { %v1068_v41 = vpop.f32.mrb[4].mxu0  ;;  %v1084_v42 = vpop.f32.mrb[4].mxu1 }
 0x157   : > { %v790_v43 = vadd.f32 %v1068_v41, %v1576_v24  ;;  %v806_v44 = vadd.f32 %v1084_v42, %v1576_v24  ;;  %v567_v45 = vpop.f32.mrb[5].mxu0  ;;  %v631_v46 = vpop.f32.mrb[5].mxu1 }
 0x158   : > { %v788_v47 = vadd.f32 %v1576_v24, %v567_v45  ;;  %v804_v48 = vadd.f32 %v1576_v24, %v631_v46  ;;  %v1069_v49 = vpop.f32.mrb[6].mxu0  ;;  %v1085_v50 = vpop.f32.mrb[6].mxu1 }
 0x159   : > { %822 = vst [vmem:[%s1582_s10 + $0x30] sm:$0xff] %v790_v43  ;;  %838 = vst [vmem:[%s1582_s10 + $0xb0] sm:$0xff] %v806_v44  ;;  %v791_v51 = vadd.f32 %v1069_v49, %v1576_v24  ;;  %v807_v52 = vadd.f32 %v1085_v50, %v1576_v24  ;;  %v570_v53 = vpop.f32.mrb[7].mxu0  ;;  %v634_v54 = vpop.f32.mrb[7].mxu1 }
 0x15a   : > { %820 = vst [vmem:[%s1582_s10 + $0x20] sm:$0xff] %v788_v47  ;;  %836 = vst [vmem:[%s1582_s10 + $0xa0] sm:$0xff] %v804_v48  ;;  %v789_v55 = vadd.f32 %v1576_v24, %v570_v53  ;;  %v805_v56 = vadd.f32 %v1576_v24, %v634_v54 }
 0x15b   : > { %823 = vst [vmem:[%s1582_s10 + $0x38] sm:$0xff] %v791_v51  ;;  %839 = vst [vmem:[%s1582_s10 + $0xb8] sm:$0xff] %v807_v52 }
 0x15c   : > { %821 = vst [vmem:[%s1582_s10 + $0x28] sm:$0xff] %v789_v55  ;;  %837 = vst [vmem:[%s1582_s10 + $0xa8] sm:$0xff] %v805_v56 }
 0x15e   : > { %v1072_v57 = vpop.f32.mrb[8].mxu0  ;;  %v1088_v58 = vpop.f32.mrb[8].mxu1 }
 0x15f   : > { %v794_v59 = vadd.f32 %v1072_v57, %v1576_v24  ;;  %v810_v60 = vadd.f32 %v1088_v58, %v1576_v24  ;;  %v583_v61 = vpop.f32.mrb[9].mxu0  ;;  %v647_v62 = vpop.f32.mrb[9].mxu1 }
 0x160   : > { %v792_v63 = vadd.f32 %v1576_v24, %v583_v61  ;;  %v808_v0 = vadd.f32 %v1576_v24, %v647_v62  ;;  %v1073_v1 = vpop.f32.mrb[10].mxu0  ;;  %v1089_v2 = vpop.f32.mrb[10].mxu1 }
 0x161   : > { %826 = vst [vmem:[%s1582_s10 + $0x50] sm:$0xff] %v794_v59  ;;  %842 = vst [vmem:[%s1582_s10 + $0xd0] sm:$0xff] %v810_v60  ;;  %v795_v3 = vadd.f32 %v1073_v1, %v1576_v24  ;;  %v811_v4 = vadd.f32 %v1089_v2, %v1576_v24  ;;  %v586_v5 = vpop.f32.mrb[11].mxu0  ;;  %v650_v6 = vpop.f32.mrb[11].mxu1 }
 0x162   : > { %824 = vst [vmem:[%s1582_s10 + $0x40] sm:$0xff] %v792_v63  ;;  %840 = vst [vmem:[%s1582_s10 + $0xc0] sm:$0xff] %v808_v0  ;;  %v793_v7 = vadd.f32 %v1576_v24, %v586_v5  ;;  %v809_v8 = vadd.f32 %v1576_v24, %v650_v6 }
 0x163   : > { %827 = vst [vmem:[%s1582_s10 + $0x58] sm:$0xff] %v795_v3  ;;  %843 = vst [vmem:[%s1582_s10 + $0xd8] sm:$0xff] %v811_v4 }
 0x164   : > { %825 = vst [vmem:[%s1582_s10 + $0x48] sm:$0xff] %v793_v7  ;;  %841 = vst [vmem:[%s1582_s10 + $0xc8] sm:$0xff] %v809_v8 }
 0x166   : > { %v1076_v9 = vpop.f32.mrb[12].mxu0  ;;  %v1092_v10 = vpop.f32.mrb[12].mxu1 }
 0x167   : > { %v798_v11 = vadd.f32 %v1076_v9, %v1576_v24  ;;  %v814_v12 = vadd.f32 %v1092_v10, %v1576_v24  ;;  %v599_v13 = vpop.f32.mrb[13].mxu0  ;;  %v663_v14 = vpop.f32.mrb[13].mxu1 }
 0x168   : > { %v796_v15 = vadd.f32 %v1576_v24, %v599_v13  ;;  %v812_v16 = vadd.f32 %v1576_v24, %v663_v14  ;;  %v1077_v17 = vpop.f32.mrb[14].mxu0  ;;  %v1093_v18 = vpop.f32.mrb[14].mxu1 }
 0x169   : > { %830 = vst [vmem:[%s1582_s10 + $0x70] sm:$0xff] %v798_v11  ;;  %846 = vst [vmem:[%s1582_s10 + $0xf0] sm:$0xff] %v814_v12  ;;  %v799_v19 = vadd.f32 %v1077_v17, %v1576_v24  ;;  %v815_v20 = vadd.f32 %v1093_v18, %v1576_v24  ;;  %v602_v21 = vpop.f32.mrb[15].mxu0  ;;  %v666_v22 = vpop.f32.mrb[15].mxu1 }
 0x16a   : > { %828 = vst [vmem:[%s1582_s10 + $0x60] sm:$0xff] %v796_v15  ;;  %844 = vst [vmem:[%s1582_s10 + $0xe0] sm:$0xff] %v812_v16  ;;  %v797_v23 = vadd.f32 %v1576_v24, %v602_v21  ;;  %v813_v25 = vadd.f32 %v1576_v24, %v666_v22 }
 0x16b   : > { %831 = vst [vmem:[%s1582_s10 + $0x78] sm:$0xff] %v799_v19  ;;  %847 = vst [vmem:[%s1582_s10 + $0xf8] sm:$0xff] %v815_v20 }
 0x16c   : > { %829 = vst [vmem:[%s1582_s10 + $0x68] sm:$0xff] %v797_v23  ;;  %845 = vst [vmem:[%s1582_s10 + $0xe8] sm:$0xff] %v813_v25 }
 0x16d   : > { %1282 = shalt.err (!%p1279_p5)
}
 0x16e   : > { %s1283_s29 = scalar_lea.hbm %s1641_s19, 4096  ;;  %s1287_s20 = scalar_lea.hbm %s1703_s3, 8192 }
 0x16f   : > { %p1284_p9 = scmp.ne.s32.totalorder %s1641_s19, %s1283_s29  ;;  %p1288_p3 = scmp.lt.u32.totalorder %s1641_s19, %s1703_s3 }
 0x170   : > { %p1289_p7 = scmp.lt.u32.totalorder %s1287_s20, %s1283_s29  ;;  %p1291_p4 = scmp.lt.u32.totalorder %s1283_s29, %s1641_s19 }
 0x171   : > { %p1285_p1 = pnand %p1284_p9, %p1483_p10 }
 0x172   : > { %p1290_p13 = por %p1289_p7, %p1288_p3 }
 0x173   : > { %p1286_p2 = pneg %p1285_p1 }
 0x174   : > { %p1292_p6 = por %p1291_p4, %p1290_p13 }
 0x176   : > { %p1293_p8 = pnand %p1292_p6, %p1286_p2 }
 0x178   : > { %1296 = shalt.err (!%p1293_p8)
}
 0x179   : > { %s1362_s10 = smov 128   ;;  %s1363_s11 = smov 8  }
 0x17a   : > { %1116 = dma.vmem_to_hbm [thread:$0]  (%p1483_p10), %s1643_s9, 4096, %s1641_s19, %s849_s25, %s1362_s10, %s1362_s10, %s1363_s11  }
 0x17b PF: > { %s878_s15 = sand.u32 1, %s1335_s12   ;;  %p1721_p12 = scmp.ne.s32.totalorder %s1711_s23, 0 }
 0x17c   : > { %p1722_p11 = scmp.ge.s32.totalorder %s1355_s17, 2  ;;  %s879_s18 = scalar_lea.sflag [#allocation5], %s878_s15 }
 0x17e   : > { %p1127_p0 = pnand %p1722_p11, %p1721_p12 }
 0x180   : > { %1330 = dma.done.wait (!%p1127_p0), %s879_s18, 4096  }
 0x181   : > { %1332 = vsyncadd (!%p1127_p0), %s879_s18, 4294963200  ;;  %s20_s17 = sadd.s32 1, %s1355_s17   ;;  %s1723_s12 = smov %s1339_s13 }
 0x182   : > { %p17_p5 = scmp.ge.s32.totalorder %s20_s17, 4   ;;  %s1724_s13 = smov %s1343_s14 }
 0x183   : > { %s1725_s14 = smov %s1492_s5  ;;  %s1726_s15 = smov %s1351_s16 }
 0x184   : > { %s1727_s16 = smov %s1729_s28  ;;  %19 = sbr.rel (!%p17_p5) target bundleno = 7 (0x7), region = 93 }
 0x18b   :  { %884 = vsyncpa [#allocation4], 1 }
 0x18c   :  { %886 = vsyncpa [#allocation4 + $0x1], 1 }
 0x18d   :  { %887 = vsyncpa [#allocation7], 1 }
 0x18e   :  { %888 = vsyncpa [#allocation5], 1 }
 0x18f   :  { %890 = vsyncpa [#allocation5 + $0x1], 1 }

</bundles_post_ra>
